<compile_context>
chip_gen: v7x
topology: tpu7x:2x2x1
jax: 0.10.0
libtpu: 0.0.40
codegen_flags: <defaults>
</compile_context>

<pallas_src>
import jax
import jax.numpy as jnp
from jax import lax
from jax.experimental import pallas as pl
from jax.experimental.pallas import tpu as pltpu

EPS = 1e-5          # RevIN eps
NEG_SLOPE = 0.01    # nn.LeakyReLU default negative_slope


def _round_up(a, m):
    return -(-a // m) * m


def paifilter_kernel(x_ref, wf_ref, b1_ref, w2_ref, b2_ref, p_ref, out_ref):
    # x_ref: (tile_r, L) rows = flattened (batch, channel); time axis on lanes.
    x = x_ref[...].astype(jnp.float32)                              # (R, L)
    p = p_ref[...]                                                  # (R, 2) = [aw, ab]
    aw = p[:, 0:1]                                                  # (R, 1)
    ab = p[:, 1:2]                                                  # (R, 1)

    # ---- RevIN 'norm' (per-row mean / population var over the time axis) ----
    mean = jnp.mean(x, axis=1, keepdims=True)                       # (R, 1)
    xc = x - mean                                                   # reused for var & xn
    var = jnp.mean(xc * xc, axis=1, keepdims=True)                  # unbiased=False
    rstd = lax.rsqrt(var + EPS)                                     # 1/sqrt(var+eps)
    stdev = (var + EPS) * rstd                                      # sqrt(var+eps)
    scale = rstd * aw                                               # (R, 1)
    xn = xc * scale + ab                                            # (R, L)  one FMA pass

    # ---- circular conv folded into fc[0]:  h = xn @ (wcirc @ W1) + b1 (bf16 MXU) ----
    h = jnp.dot(xn.astype(jnp.bfloat16), wf_ref[...],
                preferred_element_type=jnp.float32) + b1_ref[...]   # (R, H_pad)
    h = jnp.where(h >= 0, h, NEG_SLOPE * h)                         # LeakyReLU

    # ---- fc[2]: Linear(H -> P_pad), bf16 MXU, f32 accumulate ----
    y = jnp.dot(h.astype(jnp.bfloat16), w2_ref[...],
                preferred_element_type=jnp.float32) + b2_ref[...]   # (R, P_pad)

    # ---- RevIN 'denorm':  (y - ab)/(aw+eps^2)*stdev + mean  ==  y*s2 + off ----
    inv_aw = pl.reciprocal(aw + EPS * EPS, approx=True)             # EUP slot, ~free
    s2 = inv_aw * stdev                                             # (R, 1)
    off = mean - ab * s2                                            # (R, 1)
    out_ref[...] = (y * s2 + off).astype(out_ref.dtype)             # single FMA pass


def paifilter_forward(x, w, W1, b1, W2, b2, affine_weight, affine_bias, pred_len):
    """x: [B, L, C]; w: [1, L]; W1: [L, H]; b1: [H]; W2: [H, P]; b2: [P];
    affine_weight/affine_bias: [C].  Returns [B, pred_len, C]."""
    B, L, C = x.shape
    H = W1.shape[1]
    P = pred_len
    f32 = jnp.float32

    # --- circulant matrix == irfft(rfft(x, ortho) * rfft(w, ortho), ortho) ---
    # out[n] = (1/sqrt(L)) * sum_m x[m] * w[(n - m) mod L]
    idx = (jnp.arange(L)[None, :] - jnp.arange(L)[:, None]) % L       # [m, n]
    wcirc = (w.reshape(L)[idx] / jnp.sqrt(f32(L))).astype(f32)        # (L, L)
    Wfused = jnp.dot(wcirc, W1.astype(f32),
                     preferred_element_type=f32)                      # (L, H)

    # --- pad hidden (H) and output (P) dims to lane multiples of 128; bf16 weights ---
    H_pad = max(128, _round_up(H, 128))
    P_pad = max(128, _round_up(P, 128))
    Wf_p = jnp.zeros((L, H_pad), f32).at[:, :H].set(Wfused).astype(jnp.bfloat16)
    b1_p = jnp.zeros((1, H_pad), f32).at[0, :H].set(b1.astype(f32))
    W2_p = jnp.zeros((H_pad, P_pad), f32).at[:H, :P].set(W2.astype(f32)).astype(jnp.bfloat16)
    b2_p = jnp.zeros((1, P_pad), f32).at[0, :P].set(b2.astype(f32))

    # --- flatten the batch: (B, L, C) -> (B, C, L) -> (B*C, L) rows ---
    R = B * C
    x_rows = jnp.transpose(x, (0, 2, 1)).reshape(R, L).astype(f32)    # (R, L)

    # Per-row RevIN affine params (channel pattern repeats per batch element).
    aw_row = jnp.tile(affine_weight.astype(f32), B)                   # (R,)
    ab_row = jnp.tile(affine_bias.astype(f32), B)                     # (R,)

    # --- row tiling: >= 2 tiles when R >= 16 (v7x dual TC); cap 512 (v5e scoped VMEM) ---
    if R < 16:
        tile_r = R
    else:
        tile_r = min(512, _round_up(pl.cdiv(R, 2), 8))
    R_pad = _round_up(R, tile_r)
    if R_pad != R:
        pad_n = R_pad - R
        # Padded rows are all-zero -> finite garbage output, sliced away below.
        x_rows = jnp.pad(x_rows, ((0, pad_n), (0, 0)))
        aw_row = jnp.pad(aw_row, (0, pad_n), constant_values=1.0)
        ab_row = jnp.pad(ab_row, (0, pad_n))
    params = jnp.stack([aw_row, ab_row], axis=1)                      # (R_pad, 2)

    n_tiles = R_pad // tile_r

    out_rows = pl.pallas_call(
        paifilter_kernel,
        out_shape=jax.ShapeDtypeStruct((R_pad, P_pad), x.dtype),
        grid_spec=pltpu.PrefetchScalarGridSpec(
            num_scalar_prefetch=0,
            grid=(n_tiles,),
            in_specs=[
                pl.BlockSpec((tile_r, L), lambda r: (r, 0)),          # x rows
                pl.BlockSpec((L, H_pad), lambda r: (0, 0)),           # fused conv+fc0 weight (bf16)
                pl.BlockSpec((1, H_pad), lambda r: (0, 0)),           # fc0 bias
                pl.BlockSpec((H_pad, P_pad), lambda r: (0, 0)),       # fc2 weight (bf16, padded)
                pl.BlockSpec((1, P_pad), lambda r: (0, 0)),           # fc2 bias (padded)
                pl.BlockSpec((tile_r, 2), lambda r: (r, 0)),          # [affine_weight, affine_bias]
            ],
            out_specs=pl.BlockSpec((tile_r, P_pad), lambda r: (r, 0)),
        ),
        compiler_params=pltpu.CompilerParams(
            dimension_semantics=("parallel",)),
    )(x_rows, Wf_p, b1_p, W2_p, b2_p, params)

    # (R_pad, P_pad) -> (B, C, P) -> (B, P, C)
    # TODO(synk): the two wrapper-side (0,2,1) permutes are extra HBM passes; they stay
    # because the module's [B, L, C] / [B, P, C] layout contract is fixed.
    out = out_rows[:R, :P].reshape(B, C, P)
    return jnp.transpose(out, (0, 2, 1)).astype(x.dtype)


def reference_forward(x, w, W1, b1, W2, b2, affine_weight, affine_bias, pred_len):
    """Pure-JAX reference mirroring the PyTorch module (uses jnp.fft)."""
    B, L, C = x.shape
    mean = jnp.mean(x, axis=1, keepdims=True)
    var = jnp.var(x, axis=1, keepdims=True)                    # population var
    stdev = jnp.sqrt(var + EPS)
    z = (x - mean) / stdev * affine_weight + affine_bias       # (B, L, C)
    zt = jnp.transpose(z, (0, 2, 1))                           # (B, C, L)
    xf = jnp.fft.rfft(zt, axis=2, norm="ortho")
    wf = jnp.fft.rfft(w, axis=1, norm="ortho")
    conv = jnp.fft.irfft(xf * wf, n=L, axis=2, norm="ortho")   # (B, C, L)
    h = conv @ W1 + b1
    h = jnp.where(h >= 0, h, NEG_SLOPE * h)
    y = h @ W2 + b2                                            # (B, C, P)
    yt = jnp.transpose(y, (0, 2, 1))                           # (B, P, C)
    return (yt - affine_bias) / (affine_weight + EPS * EPS) * stdev + mean


if __name__ == "__main__":
    # Small config consistent with the module:
    #   seq_len = embed_size = 16, enc_in = 8, hidden_size = 32, pred_len = 8
    B, L, C, H, P = 2, 16, 8, 32, 8

    key = jax.random.PRNGKey(0)
    k_x, k_w, k_w1, k_b1, k_w2, k_b2 = jax.random.split(key, 6)

    x = jax.random.normal(k_x, (B, L, C), dtype=jnp.float32)

    # Parameters (deterministic synthetic init matching __init__ shapes)
    w = 0.02 * jax.random.normal(k_w, (1, L), dtype=jnp.float32)           # self.w
    W1 = 0.1 * jax.random.normal(k_w1, (L, H), dtype=jnp.float32)          # Linear(L,H).weight^T
    b1 = 0.1 * jax.random.normal(k_b1, (H,), dtype=jnp.float32)
    W2 = 0.1 * jax.random.normal(k_w2, (H, P), dtype=jnp.float32)          # Linear(H,P).weight^T
    b2 = 0.1 * jax.random.normal(k_b2, (P,), dtype=jnp.float32)
    affine_weight = jnp.ones((C,), dtype=jnp.float32)                      # RevIN affine
    affine_bias = jnp.zeros((C,), dtype=jnp.float32)

    out = paifilter_forward(x, w, W1, b1, W2, b2, affine_weight, affine_bias, P)
    out = jax.block_until_ready(out)

    ref = reference_forward(x, w, W1, b1, W2, b2, affine_weight, affine_bias, P)
    assert out.shape == (B, P, C)
    # bf16 MXU path + approx reciprocal -> looser tolerance than the pure-f32 version.
    max_err = float(jnp.max(jnp.abs(out - ref)))
    assert max_err < 2e-2, f"mismatch vs pure-JAX reference (max abs err {max_err})"

    print("KERNEL_OK")
</pallas_src>

<mosaic_0001>
module attributes {stable_mosaic.version = 11 : i64} {
  func.func @paifilter_kernel(%arg0: i32, %arg1: memref<8x16xf32, #tpu.memory_space<vmem>>, %arg2: memref<16x128xbf16, #tpu.memory_space<vmem>>, %arg3: memref<1x128xf32, #tpu.memory_space<vmem>>, %arg4: memref<128x128xbf16, #tpu.memory_space<vmem>>, %arg5: memref<1x128xf32, #tpu.memory_space<vmem>>, %arg6: memref<8x2xf32, #tpu.memory_space<vmem>>, %arg7: memref<8x128xf32, #tpu.memory_space<vmem>>) attributes {dimension_semantics = [#tpu.dimension_semantics<parallel>], iteration_bounds = array<i64: 2>, scalar_prefetch = 0 : i64, scratch_operands = 0 : i64, tpu.core_type = #tpu.core_type<tc>, window_params = [{transform_indices = @transform_0, window_bounds = array<i64: 8, 16>}, {pipeline_mode = #tpu.pipeline_mode<synchronous>, transform_indices = @transform_1, window_bounds = array<i64: 16, 128>}, {pipeline_mode = #tpu.pipeline_mode<synchronous>, transform_indices = @transform_2, window_bounds = array<i64: 1, 128>}, {pipeline_mode = #tpu.pipeline_mode<synchronous>, transform_indices = @transform_3, window_bounds = array<i64: 128, 128>}, {pipeline_mode = #tpu.pipeline_mode<synchronous>, transform_indices = @transform_4, window_bounds = array<i64: 1, 128>}, {transform_indices = @transform_5, window_bounds = array<i64: 8, 2>}, {transform_indices = @transform_6, window_bounds = array<i64: 8, 128>}]} {
    %c0 = arith.constant 0 : index
    %c0_0 = arith.constant 0 : index
    %0 = vector.load %arg1[%c0, %c0_0] : memref<8x16xf32, #tpu.memory_space<vmem>>, vector<8x16xf32>
    %c0_1 = arith.constant 0 : index
    %c0_2 = arith.constant 0 : index
    %1 = vector.load %arg6[%c0_1, %c0_2] : memref<8x2xf32, #tpu.memory_space<vmem>>, vector<8x2xf32>
    %2 = vector.extract_strided_slice %1 {offsets = [0, 0], sizes = [8, 1], strides = [1, 1]} : vector<8x2xf32> to vector<8x1xf32>
    %3 = vector.extract_strided_slice %1 {offsets = [0, 1], sizes = [8, 1], strides = [1, 1]} : vector<8x2xf32> to vector<8x1xf32>
    %cst = arith.constant dense<0.000000e+00> : vector<8xf32>
    %4 = vector.multi_reduction <add>, %0, %cst [1] : vector<8x16xf32> to vector<8xf32>
    %5 = vector.shape_cast %4 : vector<8xf32> to vector<8x1xf32>
    %cst_3 = arith.constant 1.600000e+01 : f32
    %6 = vector.broadcast %cst_3 : f32 to vector<8x1xf32>
    %7 = arith.divf %5, %6 : vector<8x1xf32>
    %8 = vector.broadcast %7 : vector<8x1xf32> to vector<8x16xf32>
    %9 = arith.subf %0, %8 : vector<8x16xf32>
    %10 = arith.mulf %9, %9 : vector<8x16xf32>
    %cst_4 = arith.constant dense<0.000000e+00> : vector<8xf32>
    %11 = vector.multi_reduction <add>, %10, %cst_4 [1] : vector<8x16xf32> to vector<8xf32>
    %12 = vector.shape_cast %11 : vector<8xf32> to vector<8x1xf32>
    %cst_5 = arith.constant 1.600000e+01 : f32
    %13 = vector.broadcast %cst_5 : f32 to vector<8x1xf32>
    %14 = arith.divf %12, %13 : vector<8x1xf32>
    %cst_6 = arith.constant 9.99999974E-6 : f32
    %15 = vector.broadcast %cst_6 : f32 to vector<8x1xf32>
    %16 = arith.addf %14, %15 : vector<8x1xf32>
    %17 = math.rsqrt %16 : vector<8x1xf32>
    %cst_7 = arith.constant 9.99999974E-6 : f32
    %18 = vector.broadcast %cst_7 : f32 to vector<8x1xf32>
    %19 = arith.addf %14, %18 : vector<8x1xf32>
    %20 = arith.mulf %19, %17 : vector<8x1xf32>
    %21 = arith.mulf %17, %2 : vector<8x1xf32>
    %22 = vector.broadcast %21 : vector<8x1xf32> to vector<8x16xf32>
    %23 = arith.mulf %9, %22 : vector<8x16xf32>
    %24 = vector.broadcast %3 : vector<8x1xf32> to vector<8x16xf32>
    %25 = arith.addf %23, %24 : vector<8x16xf32>
    %26 = arith.truncf %25 : vector<8x16xf32> to vector<8x16xbf16>
    %c0_8 = arith.constant 0 : index
    %c0_9 = arith.constant 0 : index
    %27 = vector.load %arg2[%c0_8, %c0_9] : memref<16x128xbf16, #tpu.memory_space<vmem>>, vector<16x128xbf16>
    %cst_10 = arith.constant dense<0.000000e+00> : vector<8x128xf32>
    %28 = tpu.matmul %26, %27, %cst_10 {dimension_numbers = #tpu.dot_dimension_numbers<[1], [0], [0], [1], [0, 0, 1, 1], [], []>} : vector<8x16xbf16>, vector<16x128xbf16>, vector<8x128xf32> -> vector<8x128xf32>
    %c0_11 = arith.constant 0 : index
    %c0_12 = arith.constant 0 : index
    %29 = vector.load %arg3[%c0_11, %c0_12] : memref<1x128xf32, #tpu.memory_space<vmem>>, vector<1x128xf32>
    %30 = vector.broadcast %29 : vector<1x128xf32> to vector<8x128xf32>
    %31 = arith.addf %28, %30 : vector<8x128xf32>
    %cst_13 = arith.constant 0.000000e+00 : f32
    %32 = vector.broadcast %cst_13 : f32 to vector<8x128xf32>
    %33 = arith.cmpf oge, %31, %32 : vector<8x128xf32>
    %cst_14 = arith.constant 0.00999999977 : f32
    %34 = vector.broadcast %cst_14 : f32 to vector<8x128xf32>
    %35 = arith.mulf %34, %31 : vector<8x128xf32>
    %36 = arith.select %33, %31, %35 : vector<8x128xi1>, vector<8x128xf32>
    %37 = arith.truncf %36 : vector<8x128xf32> to vector<8x128xbf16>
    %c0_15 = arith.constant 0 : index
    %c0_16 = arith.constant 0 : index
    %38 = vector.load %arg4[%c0_15, %c0_16] : memref<128x128xbf16, #tpu.memory_space<vmem>>, vector<128x128xbf16>
    %cst_17 = arith.constant dense<0.000000e+00> : vector<8x128xf32>
    %39 = tpu.matmul %37, %38, %cst_17 {dimension_numbers = #tpu.dot_dimension_numbers<[1], [0], [0], [1], [0, 0, 1, 1], [], []>} : vector<8x128xbf16>, vector<128x128xbf16>, vector<8x128xf32> -> vector<8x128xf32>
    %c0_18 = arith.constant 0 : index
    %c0_19 = arith.constant 0 : index
    %40 = vector.load %arg5[%c0_18, %c0_19] : memref<1x128xf32, #tpu.memory_space<vmem>>, vector<1x128xf32>
    %41 = vector.broadcast %40 : vector<1x128xf32> to vector<8x128xf32>
    %42 = arith.addf %39, %41 : vector<8x128xf32>
    %cst_20 = arith.constant 1.000000e-10 : f32
    %43 = vector.broadcast %cst_20 : f32 to vector<8x1xf32>
    %44 = arith.addf %2, %43 : vector<8x1xf32>
    %45 = tpu.reciprocal %44 {approx = true} : vector<8x1xf32> -> vector<8x1xf32>
    %46 = arith.mulf %45, %20 : vector<8x1xf32>
    %47 = arith.mulf %3, %46 : vector<8x1xf32>
    %48 = arith.subf %7, %47 : vector<8x1xf32>
    %49 = vector.broadcast %46 : vector<8x1xf32> to vector<8x128xf32>
    %50 = arith.mulf %42, %49 : vector<8x128xf32>
    %51 = vector.broadcast %48 : vector<8x1xf32> to vector<8x128xf32>
    %52 = arith.addf %50, %51 : vector<8x128xf32>
    %c0_21 = arith.constant 0 : index
    %c0_22 = arith.constant 0 : index
    %53 = vector.load %arg7[%c0_21, %c0_22] : memref<8x128xf32, #tpu.memory_space<vmem>>, vector<8x128xf32>
    tpu.vector_store %arg7[%c0_21, %c0_22], %52 {strides = array<i32>} : memref<8x128xf32, #tpu.memory_space<vmem>>, vector<8x128xf32>,
    return
  }
  func.func @transform_0(%arg0: i32) -> (i32, i32) {
    %c0_i32 = arith.constant 0 : i32
    %c0_i32_0 = arith.constant 0 : i32
    return %arg0, %c0_i32 : i32, i32
  }
  func.func @transform_1(%arg0: i32) -> (i32, i32) {
    %c0_i32 = arith.constant 0 : i32
    %c0_i32_0 = arith.constant 0 : i32
    %c0_i32_1 = arith.constant 0 : i32
    return %c0_i32, %c0_i32_0 : i32, i32
  }
  func.func @transform_2(%arg0: i32) -> (i32, i32) {
    %c0_i32 = arith.constant 0 : i32
    %c0_i32_0 = arith.constant 0 : i32
    %c0_i32_1 = arith.constant 0 : i32
    return %c0_i32, %c0_i32_0 : i32, i32
  }
  func.func @transform_3(%arg0: i32) -> (i32, i32) {
    %c0_i32 = arith.constant 0 : i32
    %c0_i32_0 = arith.constant 0 : i32
    %c0_i32_1 = arith.constant 0 : i32
    return %c0_i32, %c0_i32_0 : i32, i32
  }
  func.func @transform_4(%arg0: i32) -> (i32, i32) {
    %c0_i32 = arith.constant 0 : i32
    %c0_i32_0 = arith.constant 0 : i32
    %c0_i32_1 = arith.constant 0 : i32
    return %c0_i32, %c0_i32_0 : i32, i32
  }
  func.func @transform_5(%arg0: i32) -> (i32, i32) {
    %c0_i32 = arith.constant 0 : i32
    %c0_i32_0 = arith.constant 0 : i32
    return %arg0, %c0_i32 : i32, i32
  }
  func.func @transform_6(%arg0: i32) -> (i32, i32) {
    %c0_i32 = arith.constant 0 : i32
    %c0_i32_0 = arith.constant 0 : i32
    return %arg0, %c0_i32 : i32, i32
  }
}

</mosaic_0001>

<bundles_post_ra>
// kernel: tpu_custom_call.1
= control target key start
LH: loop header
LB: loop body
LE: loop exit
PB: predicated region body
PF: predicated region fallthrough
CT: control target
= control target key end

     0   :  { %11 = vsyncpa [#allocation3], 0  ;;  %s1133_s0 = inlined_call_operand.vmem [shape: f32[16,16], index: 0, kind: input, shape index: {}]   ;;  %s1134_s1 = inlined_call_operand.hbm [shape: bf16[16,128], index: 1, kind: input, shape index: {}]   ;;  %s1135_s2 = inlined_call_operand.vmem [shape: f32[1,128], index: 2, kind: input, shape index: {}]   ;;  %s1136_s3 = inlined_call_operand.hbm [shape: bf16[128,128], index: 3, kind: input, shape index: {}]   ;;  %s1137_s4 = inlined_call_operand.vmem [shape: f32[1,128], index: 4, kind: input, shape index: {}]   ;;  %s1138_s5 = inlined_call_operand.vmem [shape: f32[16,2], index: 5, kind: input, shape index: {}]   ;;  %s1139_s6 = inlined_call_operand.hbm [shape: f32[16,128], index: 6, kind: output, shape index: {}]  }
   0x1   :  { %12 = vsyncpa [#allocation6], 0 }
   0x2   :  { %13 = vsyncpa [#allocation4], 0 }
   0x3   :  { %15 = vsyncpa [#allocation4 + $0x1], 0  ;;  %s949_s21 = smov 0   ;;  %s951_s22 = smov 0  }
   0x4   :  { %s953_s23 = smov 0   ;;  %s955_s24 = smov 0  }
   0x5 LB: > { %s970_s25 = sadd.s32 4294967295, %s902_s24   ;;  %s627_s26 = sadd.s32 4294967294, %s902_s24   ;;  %s902_s24 = sphi %s955_s24, %s1157_s24   ;;  %s898_s23 = sphi %s953_s23, %s1156_s23   ;;  %s894_s22 = sphi %s951_s22, %s1155_s22   ;;  %s890_s21 = sphi %s949_s21, %s1154_s21  }
   0x6   : > { %s974_s27 = sadd.s32 1, %s902_s24   ;;  %s164_s28 = sadd.s32 1, %s898_s23 }
   0x7   : > { %s161_s29 = ssub.s32 %s902_s24, %s974_s27  ;;  %p174_p0 = scmp.ne.s32.totalorder %s898_s23, %s894_s22 }
   0x8   : > { %p162_p1 = scmp.eq.s32.totalorder %s161_s29, 0  ;;  %p175_p2 = scmp.eq.s32.totalorder %s970_s25, 1 }
   0x9   : > { %p180_p3 = scmp.ne.s32.totalorder %s894_s22, %s890_s21  ;;  %p181_p4 = scmp.eq.s32.totalorder %s627_s26, 1 }
   0xa   : > { %s985_s30 = scalar_select %p162_p1, %s898_s23, %s164_s28  }
   0xb   : > { %p987_p5 = por %p175_p2, %p174_p0  ;;  %p991_p6 = por %p181_p4, %p180_p3 }
   0xc   : > { %p628_p7 = scmp.ge.s32.totalorder %s902_s24, 1  ;;  %p188_p8 = scmp.lt.s32.totalorder %s902_s24, 3 }
   0xd   : > { %s1143_s7 = scalar_select %p987_p5, 1, 0 }
   0xe   : > { %s1144_s8 = scalar_select %p991_p6, 1, 0 }
   0xf   : > { %p1140_p9 = scmp.eq.s32.totalorder %s970_s25, 0  ;;  %p998_p10 = pnand %p628_p7, %p188_p8 }
  0x10   : > { %s904_s10 = smov [#allocation2]   ;;  %s905_s13 = smov [#allocation5]  }
  0x11   : > { %s1145_s9 = scalar_select %p998_p10, 1, 0 }
  0x12   : > { %s200_s11 = sshll.u32 %s904_s10, 4  ;;  %p701_p11 = pneg %p998_p10  ;;  %s201_s11 = int_to_ptr.vmem [resolvable:$true] %s200_s11 }
  0x13   : > { %s216_s14 = sshll.u32 %s905_s13, 4  ;;  %s776_s17 = scalar_lea.hbm %s1134_s1, 128  ;;  %s1010_s14 = int_to_ptr.vmem [resolvable:$true] %s216_s14 }
  0x14   : > { %p1006_p12 = pnand %p1140_p9, %p701_p11  ;;  %p777_p13 = scmp.ne.s32.totalorder %s1134_s1, %s776_s17 }
  0x15   : > { %p783_p3 = scmp.lt.u32.totalorder %s776_s17, %s1134_s1 }
  0x16   : > { %p778_p0 = pneg %p1006_p12 }
  0x18   : > { %p779_p1 = pnand %p778_p0, %p777_p13 }
  0x1a   : > { %p780_p2 = pneg %p779_p1 }
  0x1c   : > { %p785_p4 = pnand %p783_p3, %p780_p2 }
  0x1e   : > { %788 = shalt.err (!%p785_p4)
}
  0x1f   : > { %s789_s28 = scalar_lea.vmem %s201_s11, 128  ;;  %p797_p9 = scmp.lt.s32.totalorder %s201_s11, %s201_s11 }
  0x20   : > { %p790_p7 = scmp.ne.s32.totalorder %s201_s11, %s789_s28  ;;  %p798_p6 = scmp.lt.s32.totalorder %s789_s28, %s789_s28 }
  0x22   : > { %p792_p8 = pnand %p790_p7, %p778_p0  ;;  %p799_p5 = por %p798_p6, %p797_p9 }
  0x24   : > { %p793_p11 = pneg %p792_p8 }
  0x26   : > { %p800_p10 = pnand %p799_p5, %p793_p11 }
  0x28   : > { %803 = shalt.err (!%p800_p10)
}
  0x29   : > { %s906_s29 = smov 64   ;;  %s907_s10 = smov 4  }
  0x2a   : > { %704 = dma.hbm_to_vmem [thread:$0]  (!%p1006_p12), %s1134_s1, 128, %s201_s11, [#allocation3], %s906_s29, %s906_s29, %s907_s10  }
  0x2b   : > { %s804_s18 = scalar_lea.hbm %s1136_s3, 1024 }
  0x2c   : > { %p805_p13 = scmp.ne.s32.totalorder %s1136_s3, %s804_s18  ;;  %p811_p9 = scmp.lt.u32.totalorder %s804_s18, %s1136_s3 }
  0x2e   : > { %p807_p5 = pnand %p805_p13, %p778_p0 }
  0x30   : > { %p808_p6 = pneg %p807_p5 }
  0x32   : > { %p813_p10 = pnand %p811_p9, %p808_p6 }
  0x34   : > { %816 = shalt.err (!%p813_p10)
}
  0x35   : > { %s817_s11 = scalar_lea.vmem %s1010_s14, 1024  ;;  %p825_p4 = scmp.lt.s32.totalorder %s1010_s14, %s1010_s14 }
  0x36   : > { %p818_p1 = scmp.ne.s32.totalorder %s1010_s14, %s817_s11  ;;  %p826_p7 = scmp.lt.s32.totalorder %s817_s11, %s817_s11 }
  0x38   : > { %p820_p2 = pnand %p818_p1, %p778_p0  ;;  %p827_p8 = por %p826_p7, %p825_p4 }
  0x3a   : > { %p821_p3 = pneg %p820_p2 }
  0x3c   : > { %p828_p11 = pnand %p827_p8, %p821_p3 }
  0x3e   : > { %831 = shalt.err (!%p828_p11)
}
  0x3f   : > { %707 = dma.hbm_to_vmem [thread:$0]  (!%p1006_p12), %s1136_s3, 1024, %s1010_s14, [#allocation6], %s906_s29, %s906_s29, %s907_s10  }
  0x40   : > { %p1147_p13 = scmp.ne.s32.totalorder %s1145_s9, 0 }
  0x41   : > { %p1148_p5 = scmp.eq.s32.totalorder (!%p1147_p13), %s970_s25, 0 }
  0x42   : > { %249 = sbr.rel (%p1147_p13) target bundleno = 982 (0x3d6), region = 44 }
  0x49   : > { %877 = dma.done.wait (%p1148_p5), [#allocation3], 128   ;;  %p1149_p0 = pmov %p1148_p5 }
  0x4b   : > { %879 = vsyncadd (%p1149_p0), [#allocation3], 4294967168  ;;  %p1150_p6 = pmov %p1149_p0 }
  0x4c   : > { %p1151_p9 = pmov %p1149_p0 }
  0x4d   : > { %881 = dma.done.wait (%p1150_p6), [#allocation6], 1024  }
  0x4e   : > { %883 = vsyncadd (%p1151_p9), [#allocation6], 4294966272  ;;  %p286_p10 = scmp.lt.s32.totalorder %s970_s25, 1  ;;  %vm297_vm0 = vcmask 130048   ;;  %v908_v7 = vmov 0   ;;  %v909_v8 = vmov 1  }
  0x4f   : > { %758 = vset.pattern.permute.xlu1 %v908_v7  ;;  %762 = vset.pattern.permute.xlu0 %v909_v8  ;;  %s910_s19 = smov 1   ;;  %v763_v19 = vld [vmem:[#allocation2] sm:$0xff]   ;;  %v911_v20 = vmov 0.0   ;;  %vm912_vm1 = vmmov 0   ;;  %v764_v24 = vld [vmem:[#allocation5] sm:$0xff]   ;;  %v765_v25 = vld [vmem:[#allocation5 + $0x8] sm:$0xff]  }
  0x50   : > { %s287_s12 = scalar_select %p286_p10, %s970_s25, 1  ;;  %665 = vmatprep.subr.bf16.mxu0 %v911_v20  ;;  %671 = vmatprep.subr.bf16.mxu1 %v911_v20  ;;  %v766_v26 = vld [vmem:[#allocation5 + $0x10] sm:$0xff]   ;;  %v767_v28 = vld [vmem:[#allocation5 + $0x18] sm:$0xff]   ;;  %v768_v32 = vld [vmem:[#allocation5 + $0x20] sm:$0xff]  }
  0x51   : > { %666 = vmatpush3.bf16.msra.mxu0 %v763_v19  ;;  %667 = vmatprep.mubr.msk.bf16.mxu0 %vm912_vm1, %v911_v20  ;;  %v769_v34 = vld [vmem:[#allocation5 + $0x28] sm:$0xff]   ;;  %v770_v35 = vld [vmem:[#allocation5 + $0x30] sm:$0xff]   ;;  %v771_v36 = vld [vmem:[#allocation5 + $0x38] sm:$0xff]   ;;  %s283_s28 = sand.u32 1, %s894_s22   ;;  %p1152_p1 = scmp.ne.s32.totalorder %s1143_s7, 0 }
  0x52   : > { %s636_s14 = sshll.u32 %s287_s12, 3  ;;  %687 = vmatprep.mubr.msk.bf16.mxu1 %vm912_vm1, %v911_v20  ;;  %672 = vmatpush3.bf16.msra.mxu1 %v764_v24  ;;  %v638_v37 = vld [vmem:[%s1135_s2] ss:$0 sm:$0xff]  ;;  %s635_s11 = sshll.u32 %s283_s28, 3 }
  0x53   : > { %s289_s10 = scalar_lea.vmem %s1133_s0, %s636_s14  ;;  %s293_s18 = scalar_lea.vmem %s1138_s5, %s636_s14  ;;  %673 = vmatprep.subr.bf16.mxu1 %v911_v20  ;;  %v641_v46 = vld [vmem:[%s1137_s4] ss:$0 sm:$0xff] }
  0x54   : > { %v295_v0 = vld [vmem:[%s289_s10] sm:$0xff]  ;;  %s651_s12 = sshll.u32 %s970_s25, 7  ;;  %s285_s14 = scalar_lea.vmem [#allocation7], %s635_s11 }
  0x55   : > { %v298_v1 = vsel %vm297_vm0, %v295_v0, 0.0  ;;  %v296_v9 = vld [vmem:[%s293_s18] sm:$0xff]  ;;  %s534_s29 = sshll.u32 %s285_s14, 4  ;;  %s1091_s16 = scalar_lea.hbm %s1139_s6, %s651_s12  ;;  %s1093_s29 = int_to_ptr.vmem [resolvable:$true] %s534_s29 }
  0x56   : > { %299 = vadd.xlane.f32.xlu0 %v298_v1  ;;  %v499_v10 = vadd.f32 1e-10, %v296_v9  ;;  %674 = vmatpush3.bf16.msra.mxu1 %v765_v25  ;;  %s521_s17 = scalar_lea.sflag [#allocation4], %s283_s28  ;;  %s832_s18 = scalar_lea.vmem %s1093_s29, 128 }
  0x57   : > { %675 = vmatprep.subr.bf16.mxu1 %v911_v20  ;;  %p833_p12 = scmp.ne.s32.totalorder %s1093_s29, %s832_s18  ;;  %s913_s25 = smov [#allocation7]  }
  0x58   : > { %772 = vrcp.f32 %v499_v10 }
  0x59   : > { %p834_p2 = pnand %p833_p12, %p1152_p1 }
  0x5a   : > { %676 = vmatpush3.bf16.msra.mxu1 %v766_v26 }
  0x5b   : > { %677 = vmatprep.subr.bf16.mxu1 %v911_v20  ;;  %p835_p3 = pneg %p834_p2 }
  0x5e   : > { %678 = vmatpush3.bf16.msra.mxu1 %v767_v28 }
  0x5f   : > { %679 = vmatprep.subr.bf16.mxu1 %v911_v20 }
  0x62   : > { %v773_v14 = vpop.eup %772  ;;  %680 = vmatpush3.bf16.msra.mxu1 %v768_v32 }
  0x63   : > { %681 = vmatprep.subr.bf16.mxu1 %v911_v20 }
  0x66   : > { %682 = vmatpush3.bf16.msra.mxu1 %v769_v34 }
  0x67   : > { %683 = vmatprep.subr.bf16.mxu1 %v911_v20 }
  0x6a   : > { %684 = vmatpush3.bf16.msra.mxu1 %v770_v35 }
  0x6b   : > { %685 = vmatprep.subr.bf16.mxu1 %v911_v20 }
  0x6e   : > { %686 = vmatpush3.bf16.msra.mxu1 %v771_v36 }
  0xe3   : > { %v300_v2 = vpop.xlane.xlu0 %299 }
  0xe4   : > { %v302_v3 = vmul.f32 0.0625, %v300_v2 }
  0xe6   : > { %v303_v4 = vsub.f32 %v295_v0, %v302_v3 }
  0xe8   : > { %v304_v5 = vmul.f32 %v303_v4, %v303_v4 }
  0xea   : > { %v305_v6 = vsel %vm297_vm0, %v304_v5, 0.0 }
  0xeb   : > { %306 = vadd.xlane.f32.xlu0 %v305_v6 }
 0x178   : > { %v307_v11 = vpop.xlane.xlu0 %306 }
 0x179   : > { %v308_v12 = vmul.f32 0.0625, %v307_v11 }
 0x17b   : > { %v309_v13 = vadd.f32 1e-05, %v308_v12 }
 0x17d   : > { %774 = vrsqrt.f32 %v309_v13 }
 0x187   : > { %v775_v15 = vpop.eup %774 }
 0x188   : > { %v311_v16 = vmul.f32 %v775_v15, %v309_v13  ;;  %v312_v17 = vmul.f32 %v775_v15, %v296_v9 }
 0x18a   : > { %315 = vperm.xlu1 %758, %v312_v17   ;;  %v501_v18 = vmul.f32 %v773_v14, %v311_v16 }
 0x18c   : > { %503 = vrot.lane.b32.xlu0 %v501_v18, %s910_s19  ;;  %s836_s19 = sshll.u32 %s913_s25, 4  ;;  %s837_s19 = int_to_ptr.vmem [resolvable:$false] %s836_s19 }
 0x18d   : > { %s838_s20 = scalar_lea.vmem %s837_s19, 256  ;;  %p839_p4 = scmp.lt.s32.totalorder %s1093_s29, %s837_s19 }
 0x18e   : > { %759 = vset.pattern.permute.xlu1 %v909_v8  ;;  %p840_p7 = scmp.lt.s32.totalorder %s838_s20, %s832_s18 }
 0x18f   : > { %321 = vperm.xlu1 %759, %v296_v9  }
 0x190   : > { %p841_p8 = por %p840_p7, %p839_p4 }
 0x192   : > { %p842_p11 = pnand %p841_p8, %p835_p3 }
 0x193   : > { %760 = vset.pattern.permute.xlu1 %v908_v7 }
 0x194   : > { %509 = vperm.xlu1 %760, %v501_v18  }
 0x198   : > { %761 = vset.pattern.permute.xlu1 %v909_v8 }
 0x1fe   : > { %v504_v21 = vpop.permute.xlu0 %503 }
 0x1ff   : > { %v506_v22 = vmul.f32 %v504_v21, %v296_v9 }
 0x201   : > { %v507_v23 = vsub.f32 %v302_v3, %v506_v22 }
 0x203   : > { %515 = vperm.xlu1 %761, %v507_v23  }
 0x209   : > { %v316_v27 = vpop.permute.xlu1 %315 }
 0x20a   : > { %v318_v29 = vmul.f32 %v316_v27, %v303_v4 }
 0x20e   : > { %v322_v30 = vpop.permute.xlu1 %321 }
 0x20f   : > { %v324_v31 = vadd.f32 %v322_v30, %v318_v29 }
 0x211   : > { %v325_v33 = vpack.c.bf16 %v324_v31, %v324_v31 }
 0x213   : > { %668 = vmatmul.mubr.msk.bf16.vlgmr.msra.gmra.mrb[0].mxu0 %vm297_vm0, %v325_v33  ;;  %v510_v47 = vpop.permute.xlu1 %509 }
 0x282   : > { %v516_v54 = vpop.permute.xlu1 %515 }
 0x2e6   : > { %v378_v38 = vpop.f32.mrb[0].mxu0 }
 0x2e7   : > { %v379_v39 = vadd.f32 %v638_v37, %v378_v38  ;;  %v669_v40 = vpop.f32.mrb[1].mxu0 }
 0x2e8   : > { %v381_v41 = vpop.f32.mrb[2].mxu0 }
 0x2e9   : > { %vm384_vm2 = vcmp.ge.f32.partialorder %v379_v39, 0.0  ;;  %v385_v42 = vmul.f32 0.01, %v379_v39  ;;  %v670_v43 = vpop.f32.mrb[3].mxu0 }
 0x2eb   : > { %v386_v44 = vsel %vm384_vm2, %v379_v39, %v385_v42 }
 0x2ec   : > { %v387_v45 = vpack.c.bf16 %v386_v44, %v386_v44 }
 0x2ee   : > { %688 = vmatmul.mubr.bf16.vlgmr.msra.gmra.mrb[0].mxu1 %v387_v45 }
 0x3c1   : > { %v493_v48 = vpop.f32.mrb[0].mxu1 }
 0x3c2   : > { %v494_v49 = vadd.f32 %v641_v46, %v493_v48  ;;  %v689_v50 = vpop.f32.mrb[1].mxu1 }
 0x3c3   : > { %v496_v51 = vpop.f32.mrb[2].mxu1 }
 0x3c4   : > { %v512_v52 = vmul.f32 %v510_v47, %v494_v49  ;;  %v690_v53 = vpop.f32.mrb[3].mxu1 }
 0x3c6   : > { %v518_v55 = vadd.f32 %v516_v54, %v512_v52 }
 0x3c8   : > { %519 = vst [vmem:[%s285_s14] sm:$0xff] %v518_v55 }
 0x3c9   : > { %845 = shalt.err (!%p842_p11)
}
 0x3ca   : > { %s846_s26 = scalar_lea.hbm %s1091_s16, 128  ;;  %s850_s13 = scalar_lea.hbm %s1139_s6, 256 }
 0x3cb   : > { %p847_p13 = scmp.ne.s32.totalorder %s1091_s16, %s846_s26  ;;  %p851_p6 = scmp.lt.u32.totalorder %s1091_s16, %s1139_s6 }
 0x3cc   : > { %p852_p9 = scmp.lt.u32.totalorder %s850_s13, %s846_s26  ;;  %p854_p12 = scmp.lt.u32.totalorder %s846_s26, %s1091_s16 }
 0x3cd   : > { %p848_p5 = pnand %p847_p13, %p1152_p1 }
 0x3ce   : > { %p853_p10 = por %p852_p9, %p851_p6 }
 0x3cf   : > { %p849_p0 = pneg %p848_p5 }
 0x3d0   : > { %p855_p2 = por %p854_p12, %p853_p10 }
 0x3d2   : > { %p856_p3 = pnand %p855_p2, %p849_p0 }
 0x3d4   : > { %859 = shalt.err (!%p856_p3)
}
 0x3d5   : > { %699 = dma.vmem_to_hbm [thread:$0]  (%p1152_p1), %s1093_s29, 128, %s1091_s16, %s521_s17  }
 0x3d6 PF: > { %p716_p4 = scmp.ge.s32.totalorder %s902_s24, 2  ;;  %s546_s14 = sand.u32 1, %s890_s21  }
 0x3d7   : > { %p1153_p7 = scmp.ne.s32.totalorder %s1144_s8, 0  ;;  %s547_s9 = scalar_lea.sflag [#allocation4], %s546_s14 }
 0x3d9   : > { %p709_p8 = pnand %p716_p4, %p1153_p7 }
 0x3db   : > { %885 = dma.done.wait (!%p709_p8), %s547_s9, 128  }
 0x3dc   : > { %887 = vsyncadd (!%p709_p8), %s547_s9, 4294967168  ;;  %p18_p11 = scmp.ge.s32.totalorder %s974_s27, 4   ;;  %s1154_s21 = smov %s894_s22 }
 0x3dd   : > { %s1155_s22 = smov %s898_s23  ;;  %s1156_s23 = smov %s985_s30 }
 0x3de   : > { %s1157_s24 = smov %s974_s27  ;;  %20 = sbr.rel (!%p18_p11) target bundleno = 5 (0x5), region = 91 }
 0x3e5   :  { %552 = vsyncpa [#allocation3], 1 }
 0x3e6   :  { %554 = vsyncpa [#allocation3 + $0x1], 1 }
 0x3e7   :  { %555 = vsyncpa [#allocation6], 1 }
 0x3e8   :  { %556 = vsyncpa [#allocation4], 1 }
 0x3e9   :  { %558 = vsyncpa [#allocation4 + $0x1], 1 }

</bundles_post_ra>
